<compile_context>
chip_gen: v7x
topology: tpu7x:2x2x1
jax: 0.10.0
libtpu: 0.0.40
codegen_flags: <defaults>
</compile_context>

<pallas_src>
import functools

import jax
import jax.numpy as jnp
from jax.experimental import pallas as pl
from jax.experimental.pallas import tpu as pltpu


def _nonlocal_kernel(x_ref, wt_ref, bt_ref, wpg_ref, bpg_ref, ww_ref, bw_ref,
                     out_ref, kv_ref, *, n2, tq):
    """Grid = (batch, query_tile).

    x_ref  : (1, N, C) f32   full (corner-major permuted) input for this batch;
                             same block across all q tiles -> DMA'd once/batch.
    wt_ref : (C, 2*IC) bf16  theta weight zero-extended to the fused width.
    bt_ref : (1, 2*IC) f32   theta bias zero-extended.
    wpg_ref: (C, 2*IC) bf16  [w_phi | w_g] fused projection weight.
    bpg_ref: (1, 2*IC) f32   [b_phi | b_g].
    ww_ref : (2*IC, C) bf16  [0 ; w_W_eff]  (phi half zeroed, BN folded in).
    bw_ref : (1, C)    f32   effective W bias (conv bias + BN, scaled).
    out_ref: (1, TQ, C) f32  output row tile (permuted row order).
    kv_ref : (N2, 2*IC) bf16 VMEM scratch holding pooled [phi_p | g_p].
    """
    q = pl.program_id(1)

    # ---- once per batch: fused phi/g projection + 2x2 max-pool -> scratch ----
    @pl.when(q == 0)
    def _():
        xb = x_ref[0].astype(jnp.bfloat16)                                 # (N, C)
        kv = jnp.dot(xb, wpg_ref[...],
                     preferred_element_type=jnp.float32) + bpg_ref[...]    # (N, 2IC) f32
        # corner-major row order => the 4 pooling-window corners are 4
        # contiguous N2-row chunks; max over them == MaxPool2d(2,2) of the conv.
        pooled = jnp.maximum(jnp.maximum(kv[0:n2], kv[n2:2 * n2]),
                             jnp.maximum(kv[2 * n2:3 * n2], kv[3 * n2:4 * n2]))
        kv_ref[...] = pooled.astype(kv_ref.dtype)                          # bf16

    # ---- per query tile ----
    row0 = pl.multiple_of(q * tq, tq)
    x_q = x_ref[0, pl.ds(row0, tq), :]                                     # (TQ, C) f32
    x_qb = x_q.astype(jnp.bfloat16)

    # theta (zero-extended to 2*IC so no lane-slicing of kv is needed).
    theta = jnp.dot(x_qb, wt_ref[...],
                    preferred_element_type=jnp.float32) + bt_ref[...]      # (TQ, 2IC) f32

    kv_b = kv_ref[...]                                                     # (N2, 2IC) bf16

    # f = theta @ phi_p^T   (the zero half of theta kills the g columns).
    f = jax.lax.dot_general(theta.astype(jnp.bfloat16), kv_b,
                            (((1,), (1,)), ((), ())),
                            preferred_element_type=jnp.float32)            # (TQ, N2)

    # softmax over keys (f32; divide moved onto the EUP via approx reciprocal).
    m = jnp.max(f, axis=-1, keepdims=True)
    e = jnp.exp(f - m)
    s = jnp.sum(e, axis=-1, keepdims=True)
    p = e * pl.reciprocal(s, approx=True)                                  # (TQ, N2)

    # y_cat = [p@phi_p | p@g_p]; the zero rows of ww_ref kill the phi half.
    y_cat = jnp.dot(p.astype(jnp.bfloat16), kv_b,
                    preferred_element_type=jnp.float32)                    # (TQ, 2IC)
    wy = jnp.dot(y_cat.astype(jnp.bfloat16), ww_ref[...],
                 preferred_element_type=jnp.float32) + bw_ref[...]         # (TQ, C)

    out_ref[0] = wy + x_q                                                  # residual (f32)


def nonlocal_block_pallas(x_nchw, params, tq=128):
    """x_nchw: (B, C, H, W) float32.  Returns z: (B, C, H, W).

    tq: query-row tile.  128 is safe for v5e's 16 MiB scoped VMEM; on v6e/v7x
    with realistic channel counts 256-512 also fits.
    """
    B, C, H, W = x_nchw.shape
    assert H % 2 == 0 and W % 2 == 0, "MaxPool2d(2,2) path assumes even H, W"
    IC = params["w_theta"].shape[1]
    N = H * W
    N2 = N // 4

    # Pick the largest power-of-two tile <= tq that divides N (fallback: full N).
    TQ = tq
    while N % TQ != 0 and TQ >= 16:
        TQ //= 2
    if N % TQ != 0:
        TQ = N

    # ---- pack / zero-extend weights (XLA-side glue; pre-pack once in prod) ----
    f32, bf16 = jnp.float32, jnp.bfloat16
    zcol = jnp.zeros((C, IC), f32)
    w_theta_ext = jnp.concatenate([params["w_theta"], zcol], axis=1).astype(bf16)  # (C, 2IC)
    b_theta_ext = jnp.concatenate([params["b_theta"],
                                   jnp.zeros((1, IC), f32)], axis=1)                # (1, 2IC)
    w_pg = jnp.concatenate([params["w_phi"], params["w_g"]], axis=1).astype(bf16)   # (C, 2IC)
    b_pg = jnp.concatenate([params["b_phi"], params["b_g"]], axis=1)                # (1, 2IC)
    w_W_ext = jnp.concatenate([jnp.zeros_like(params["w_W_eff"]),
                               params["w_W_eff"]], axis=0).astype(bf16)              # (2IC, C)
    b_W = params["b_W_eff"]                                                          # (1, C)
    IC2 = 2 * IC

    # ---- corner-major permutation of x: rows ordered (corner, hh, ww) ----
    x_nhwc = jnp.transpose(x_nchw, (0, 2, 3, 1))                            # (B,H,W,C)
    x_perm = jnp.stack([x_nhwc[:, 0::2, 0::2, :],
                        x_nhwc[:, 0::2, 1::2, :],
                        x_nhwc[:, 1::2, 0::2, :],
                        x_nhwc[:, 1::2, 1::2, :]], axis=1).reshape(B, N, C)

    kernel = functools.partial(_nonlocal_kernel, n2=N2, tq=TQ)
    const = lambda shape: pl.BlockSpec(shape, lambda b, q: (0,) * len(shape))

    z_perm = pl.pallas_call(
        kernel,
        out_shape=jax.ShapeDtypeStruct((B, N, C), jnp.float32),
        grid=(B, N // TQ),
        in_specs=[
            pl.BlockSpec((1, N, C), lambda b, q: (b, 0, 0)),   # full x, 1 DMA/batch
            const((C, IC2)), const((1, IC2)),                  # theta (extended, bf16 w)
            const((C, IC2)), const((1, IC2)),                  # fused phi|g (bf16 w)
            const((IC2, C)), const((1, C)),                    # W (BN folded, extended)
        ],
        out_specs=pl.BlockSpec((1, TQ, C), lambda b, q: (b, q, 0)),
        scratch_shapes=[pltpu.VMEM((N2, IC2), jnp.bfloat16)],  # pooled [phi|g] cache
        compiler_params=pltpu.CompilerParams(
            dimension_semantics=("parallel", "arbitrary"),     # q carries scratch
            vmem_limit_bytes=32 * 1024 * 1024),
    )(x_perm, w_theta_ext, b_theta_ext, w_pg, b_pg, w_W_ext, b_W)

    # ---- undo the corner-major permutation: (B, dh, dw, hh, ww, C) -> NCHW ----
    z = z_perm.reshape(B, 2, 2, H // 2, W // 2, C)
    z = jnp.transpose(z, (0, 3, 1, 4, 2, 5)).reshape(B, H, W, C)
    return jnp.transpose(z, (0, 3, 1, 2))


def nonlocal_block_reference(x_nchw, params):
    """Pure-JAX reference mirroring the PyTorch forward (for validation)."""
    B, C, H, W = x_nchw.shape
    IC = params["w_theta"].shape[1]
    x_nhwc = jnp.transpose(x_nchw, (0, 2, 3, 1))

    conv = lambda x, w, b: x @ w + b[0]
    theta = conv(x_nhwc, params["w_theta"], params["b_theta"]).reshape(B, H * W, IC)
    phi = conv(x_nhwc, params["w_phi"], params["b_phi"])                # (B,H,W,IC)
    g = conv(x_nhwc, params["w_g"], params["b_g"])

    def pool(a):  # MaxPool2d(kernel=(2,2), stride=(2,2))
        return a.reshape(B, H // 2, 2, W // 2, 2, IC).max(axis=(2, 4)) \
                .reshape(B, (H // 2) * (W // 2), IC)

    phi_p, g_p = pool(phi), pool(g)
    f = jnp.einsum("bnc,bmc->bnm", theta, phi_p)
    f_div_C = jax.nn.softmax(f, axis=-1)
    y = jnp.einsum("bnm,bmc->bnc", f_div_C, g_p)
    wy = y @ params["w_W_eff"] + params["b_W_eff"][0]
    z = wy + x_nhwc.reshape(B, H * W, C)
    return jnp.transpose(z.reshape(B, H, W, C), (0, 3, 1, 2))


def make_params(key, in_channels, inter_channels):
    C, IC = in_channels, inter_channels
    ks = jax.random.split(key, 10)
    scale = 0.1
    w_theta = scale * jax.random.normal(ks[0], (C, IC), jnp.float32)
    b_theta = scale * jax.random.normal(ks[1], (1, IC), jnp.float32)
    w_phi = scale * jax.random.normal(ks[2], (C, IC), jnp.float32)
    b_phi = scale * jax.random.normal(ks[3], (1, IC), jnp.float32)
    w_g = scale * jax.random.normal(ks[4], (C, IC), jnp.float32)
    b_g = scale * jax.random.normal(ks[5], (1, IC), jnp.float32)
    w_W = scale * jax.random.normal(ks[6], (IC, C), jnp.float32)
    b_W = scale * jax.random.normal(ks[7], (1, C), jnp.float32)
    # BatchNorm2d (eval): running_mean=0, running_var=1, eps=1e-5; fold into W.
    gamma = 1.0 + scale * jax.random.normal(ks[8], (C,), jnp.float32)
    beta = scale * jax.random.normal(ks[9], (C,), jnp.float32)
    s = gamma / jnp.sqrt(1.0 + 1e-5)
    w_W_eff = w_W * s[None, :]
    b_W_eff = (b_W * s[None, :]) + beta[None, :]
    return dict(w_theta=w_theta, b_theta=b_theta,
                w_phi=w_phi, b_phi=b_phi,
                w_g=w_g, b_g=b_g,
                w_W_eff=w_W_eff, b_W_eff=b_W_eff)


if __name__ == "__main__":
    B, C, H, W = 2, 4, 16, 16
    IC = max(C // 2, 1)   # inter_channels = in_channels // 2 (as in __init__)

    key = jax.random.PRNGKey(0)
    kx, kp = jax.random.split(key)
    x = jax.random.normal(kx, (B, C, H, W), jnp.float32)
    params = make_params(kp, C, IC)

    z = nonlocal_block_pallas(x, params)
    z = jax.block_until_ready(z)

    z_ref = nonlocal_block_reference(x, params)
    assert z.shape == (B, C, H, W)
    err = float(jnp.max(jnp.abs(z - z_ref)))
    assert err < 1e-2, err   # bf16 matmul inputs + approx reciprocal vs f32 reference

    print("KERNEL_OK")
</pallas_src>

<mosaic_0001>
module attributes {stable_mosaic.version = 11 : i64} {
  func.func @_nonlocal_kernel(%arg0: i32, %arg1: i32, %arg2: memref<1x256x4xf32, #tpu.memory_space<vmem>>, %arg3: memref<4x4xbf16, #tpu.memory_space<vmem>>, %arg4: memref<1x4xf32, #tpu.memory_space<vmem>>, %arg5: memref<4x4xbf16, #tpu.memory_space<vmem>>, %arg6: memref<1x4xf32, #tpu.memory_space<vmem>>, %arg7: memref<4x4xbf16, #tpu.memory_space<vmem>>, %arg8: memref<1x4xf32, #tpu.memory_space<vmem>>, %arg9: memref<1x128x4xf32, #tpu.memory_space<vmem>>, %arg10: memref<64x4xbf16, #tpu.memory_space<vmem>>) attributes {dimension_semantics = [#tpu.dimension_semantics<parallel>, #tpu.dimension_semantics<arbitrary>], iteration_bounds = array<i64: 2, 2>, scalar_prefetch = 0 : i64, scratch_operands = 1 : i64, tpu.core_type = #tpu.core_type<tc>, window_params = [{transform_indices = @transform_0, window_bounds = array<i64: 1, 256, 4>}, {pipeline_mode = #tpu.pipeline_mode<synchronous>, transform_indices = @transform_1, window_bounds = array<i64: 4, 4>}, {pipeline_mode = #tpu.pipeline_mode<synchronous>, transform_indices = @transform_2, window_bounds = array<i64: 1, 4>}, {pipeline_mode = #tpu.pipeline_mode<synchronous>, transform_indices = @transform_3, window_bounds = array<i64: 4, 4>}, {pipeline_mode = #tpu.pipeline_mode<synchronous>, transform_indices = @transform_4, window_bounds = array<i64: 1, 4>}, {pipeline_mode = #tpu.pipeline_mode<synchronous>, transform_indices = @transform_5, window_bounds = array<i64: 4, 4>}, {pipeline_mode = #tpu.pipeline_mode<synchronous>, transform_indices = @transform_6, window_bounds = array<i64: 1, 4>}, {transform_indices = @transform_7, window_bounds = array<i64: 1, 128, 4>}]} {
    %c0_i32 = arith.constant 0 : i32
    %0 = arith.cmpi eq, %arg1, %c0_i32 : i32
    %1 = arith.extui %0 : i1 to i32
    %c0_i32_0 = arith.constant 0 : i32
    %2 = arith.cmpi ne, %1, %c0_i32_0 : i32
    scf.if %2 {
      %c0_20 = arith.constant 0 : index
      %c0_21 = arith.constant 0 : index
      %c0_22 = arith.constant 0 : index
      %39 = vector.load %arg2[%c0_20, %c0_21, %c0_22] : memref<1x256x4xf32, #tpu.memory_space<vmem>>, vector<1x256x4xf32>
      %40 = vector.shape_cast %39 : vector<1x256x4xf32> to vector<256x4xf32>
      %41 = arith.truncf %40 : vector<256x4xf32> to vector<256x4xbf16>
      %c0_23 = arith.constant 0 : index
      %c0_24 = arith.constant 0 : index
      %42 = vector.load %arg5[%c0_23, %c0_24] : memref<4x4xbf16, #tpu.memory_space<vmem>>, vector<4x4xbf16>
      %cst_25 = arith.constant dense<0.000000e+00> : vector<256x4xf32>
      %43 = tpu.matmul %41, %42, %cst_25 {dimension_numbers = #tpu.dot_dimension_numbers<[1], [0], [0], [1], [0, 0, 1, 1], [], []>} : vector<256x4xbf16>, vector<4x4xbf16>, vector<256x4xf32> -> vector<256x4xf32>
      %c0_26 = arith.constant 0 : index
      %c0_27 = arith.constant 0 : index
      %44 = vector.load %arg6[%c0_26, %c0_27] : memref<1x4xf32, #tpu.memory_space<vmem>>, vector<1x4xf32>
      %45 = vector.broadcast %44 : vector<1x4xf32> to vector<256x4xf32>
      %46 = arith.addf %43, %45 : vector<256x4xf32>
      %47 = vector.extract_strided_slice %46 {offsets = [0, 0], sizes = [64, 4], strides = [1, 1]} : vector<256x4xf32> to vector<64x4xf32>
      %48 = vector.extract_strided_slice %46 {offsets = [64, 0], sizes = [64, 4], strides = [1, 1]} : vector<256x4xf32> to vector<64x4xf32>
      %49 = arith.maximumf %47, %48 : vector<64x4xf32>
      %50 = vector.extract_strided_slice %46 {offsets = [128, 0], sizes = [64, 4], strides = [1, 1]} : vector<256x4xf32> to vector<64x4xf32>
      %51 = vector.extract_strided_slice %46 {offsets = [192, 0], sizes = [64, 4], strides = [1, 1]} : vector<256x4xf32> to vector<64x4xf32>
      %52 = arith.maximumf %50, %51 : vector<64x4xf32>
      %53 = arith.maximumf %49, %52 : vector<64x4xf32>
      %54 = arith.truncf %53 : vector<64x4xf32> to vector<64x4xbf16>
      %c0_28 = arith.constant 0 : index
      %c0_29 = arith.constant 0 : index
      %55 = vector.load %arg10[%c0_28, %c0_29] : memref<64x4xbf16, #tpu.memory_space<vmem>>, vector<64x4xbf16>
      tpu.vector_store %arg10[%c0_28, %c0_29], %54 {strides = array<i32>} : memref<64x4xbf16, #tpu.memory_space<vmem>>, vector<64x4xbf16>,
    } else {
    }
    %c128_i32 = arith.constant 128 : i32
    %3 = arith.muli %arg1, %c128_i32 : i32
    %4 = tpu.assume_multiple %3, 128 : i32
    %c0 = arith.constant 0 : index
    %5 = arith.index_cast %4 : i32 to index
    %c0_1 = arith.constant 0 : index
    %6 = vector.load %arg2[%c0, %5, %c0_1] : memref<1x256x4xf32, #tpu.memory_space<vmem>>, vector<1x128x4xf32>
    %7 = vector.shape_cast %6 : vector<1x128x4xf32> to vector<128x4xf32>
    %8 = arith.truncf %7 : vector<128x4xf32> to vector<128x4xbf16>
    %c0_2 = arith.constant 0 : index
    %c0_3 = arith.constant 0 : index
    %9 = vector.load %arg3[%c0_2, %c0_3] : memref<4x4xbf16, #tpu.memory_space<vmem>>, vector<4x4xbf16>
    %cst = arith.constant dense<0.000000e+00> : vector<128x4xf32>
    %10 = tpu.matmul %8, %9, %cst {dimension_numbers = #tpu.dot_dimension_numbers<[1], [0], [0], [1], [0, 0, 1, 1], [], []>} : vector<128x4xbf16>, vector<4x4xbf16>, vector<128x4xf32> -> vector<128x4xf32>
    %c0_4 = arith.constant 0 : index
    %c0_5 = arith.constant 0 : index
    %11 = vector.load %arg4[%c0_4, %c0_5] : memref<1x4xf32, #tpu.memory_space<vmem>>, vector<1x4xf32>
    %12 = vector.broadcast %11 : vector<1x4xf32> to vector<128x4xf32>
    %13 = arith.addf %10, %12 : vector<128x4xf32>
    %c0_6 = arith.constant 0 : index
    %c0_7 = arith.constant 0 : index
    %14 = vector.load %arg10[%c0_6, %c0_7] : memref<64x4xbf16, #tpu.memory_space<vmem>>, vector<64x4xbf16>
    %15 = arith.truncf %13 : vector<128x4xf32> to vector<128x4xbf16>
    %cst_8 = arith.constant dense<0.000000e+00> : vector<128x64xf32>
    %16 = tpu.matmul %15, %14, %cst_8 {dimension_numbers = #tpu.dot_dimension_numbers<[1], [1], [0], [0], [0, 0, 1, 0], [], []>} : vector<128x4xbf16>, vector<64x4xbf16>, vector<128x64xf32> -> vector<128x64xf32>
    %cst_9 = arith.constant dense<0xFF800000> : vector<128xf32>
    %17 = vector.multi_reduction <maximumf>, %16, %cst_9 [1] : vector<128x64xf32> to vector<128xf32>
    %18 = vector.shape_cast %17 : vector<128xf32> to vector<128x1xf32>
    %19 = vector.broadcast %18 : vector<128x1xf32> to vector<128x64xf32>
    %20 = arith.subf %16, %19 : vector<128x64xf32>
    %21 = math.exp %20 : vector<128x64xf32>
    %cst_10 = arith.constant dense<0.000000e+00> : vector<128xf32>
    %22 = vector.multi_reduction <add>, %21, %cst_10 [1] : vector<128x64xf32> to vector<128xf32>
    %23 = vector.shape_cast %22 : vector<128xf32> to vector<128x1xf32>
    %24 = tpu.reciprocal %23 {approx = true} : vector<128x1xf32> -> vector<128x1xf32>
    %25 = vector.broadcast %24 : vector<128x1xf32> to vector<128x64xf32>
    %26 = arith.mulf %21, %25 : vector<128x64xf32>
    %27 = arith.truncf %26 : vector<128x64xf32> to vector<128x64xbf16>
    %cst_11 = arith.constant dense<0.000000e+00> : vector<128x4xf32>
    %28 = tpu.matmul %27, %14, %cst_11 {dimension_numbers = #tpu.dot_dimension_numbers<[1], [0], [0], [1], [0, 0, 1, 1], [], []>} : vector<128x64xbf16>, vector<64x4xbf16>, vector<128x4xf32> -> vector<128x4xf32>
    %29 = arith.truncf %28 : vector<128x4xf32> to vector<128x4xbf16>
    %c0_12 = arith.constant 0 : index
    %c0_13 = arith.constant 0 : index
    %30 = vector.load %arg7[%c0_12, %c0_13] : memref<4x4xbf16, #tpu.memory_space<vmem>>, vector<4x4xbf16>
    %cst_14 = arith.constant dense<0.000000e+00> : vector<128x4xf32>
    %31 = tpu.matmul %29, %30, %cst_14 {dimension_numbers = #tpu.dot_dimension_numbers<[1], [0], [0], [1], [0, 0, 1, 1], [], []>} : vector<128x4xbf16>, vector<4x4xbf16>, vector<128x4xf32> -> vector<128x4xf32>
    %c0_15 = arith.constant 0 : index
    %c0_16 = arith.constant 0 : index
    %32 = vector.load %arg8[%c0_15, %c0_16] : memref<1x4xf32, #tpu.memory_space<vmem>>, vector<1x4xf32>
    %33 = vector.broadcast %32 : vector<1x4xf32> to vector<128x4xf32>
    %34 = arith.addf %31, %33 : vector<128x4xf32>
    %35 = arith.addf %34, %7 : vector<128x4xf32>
    %c0_17 = arith.constant 0 : index
    %c0_18 = arith.constant 0 : index
    %c0_19 = arith.constant 0 : index
    %36 = vector.load %arg9[%c0_17, %c0_18, %c0_19] : memref<1x128x4xf32, #tpu.memory_space<vmem>>, vector<1x128x4xf32>
    %37 = vector.shape_cast %36 : vector<1x128x4xf32> to vector<128x4xf32>
    %38 = vector.shape_cast %35 : vector<128x4xf32> to vector<1x128x4xf32>
    tpu.vector_store %arg9[%c0_17, %c0_18, %c0_19], %38 {strides = array<i32>} : memref<1x128x4xf32, #tpu.memory_space<vmem>>, vector<1x128x4xf32>,
    return
  }
  func.func @transform_0(%arg0: i32, %arg1: i32) -> (i32, i32, i32) {
    %c0_i32 = arith.constant 0 : i32
    %c0_i32_0 = arith.constant 0 : i32
    %c0_i32_1 = arith.constant 0 : i32
    return %arg0, %c0_i32, %c0_i32_0 : i32, i32, i32
  }
  func.func @transform_1(%arg0: i32, %arg1: i32) -> (i32, i32) {
    %c0_i32 = arith.constant 0 : i32
    %c0_i32_0 = arith.constant 0 : i32
    %c0_i32_1 = arith.constant 0 : i32
    return %c0_i32, %c0_i32_0 : i32, i32
  }
  func.func @transform_2(%arg0: i32, %arg1: i32) -> (i32, i32) {
    %c0_i32 = arith.constant 0 : i32
    %c0_i32_0 = arith.constant 0 : i32
    %c0_i32_1 = arith.constant 0 : i32
    return %c0_i32, %c0_i32_0 : i32, i32
  }
  func.func @transform_3(%arg0: i32, %arg1: i32) -> (i32, i32) {
    %c0_i32 = arith.constant 0 : i32
    %c0_i32_0 = arith.constant 0 : i32
    %c0_i32_1 = arith.constant 0 : i32
    return %c0_i32, %c0_i32_0 : i32, i32
  }
  func.func @transform_4(%arg0: i32, %arg1: i32) -> (i32, i32) {
    %c0_i32 = arith.constant 0 : i32
    %c0_i32_0 = arith.constant 0 : i32
    %c0_i32_1 = arith.constant 0 : i32
    return %c0_i32, %c0_i32_0 : i32, i32
  }
  func.func @transform_5(%arg0: i32, %arg1: i32) -> (i32, i32) {
    %c0_i32 = arith.constant 0 : i32
    %c0_i32_0 = arith.constant 0 : i32
    %c0_i32_1 = arith.constant 0 : i32
    return %c0_i32, %c0_i32_0 : i32, i32
  }
  func.func @transform_6(%arg0: i32, %arg1: i32) -> (i32, i32) {
    %c0_i32 = arith.constant 0 : i32
    %c0_i32_0 = arith.constant 0 : i32
    %c0_i32_1 = arith.constant 0 : i32
    return %c0_i32, %c0_i32_0 : i32, i32
  }
  func.func @transform_7(%arg0: i32, %arg1: i32) -> (i32, i32, i32) {
    %c0_i32 = arith.constant 0 : i32
    %c0_i32_0 = arith.constant 0 : i32
    return %arg0, %arg1, %c0_i32 : i32, i32, i32
  }
}

</mosaic_0001>

<bundles_post_ra>
// kernel: tpu_custom_call.1
= control target key start
LH: loop header
LB: loop body
LE: loop exit
PB: predicated region body
PF: predicated region fallthrough
CT: control target
= control target key end

     0   :  { %s1918_s24 = smov 0   ;;  %s1920_s25 = smov 0   ;;  %s2378_s0 = inlined_call_operand.vmem [shape: f32[2,256,4], index: 0, kind: input, shape index: {}]   ;;  %s2379_s1 = inlined_call_operand.vmem [shape: bf16[4,4], index: 1, kind: input, shape index: {}]   ;;  %s2380_s2 = inlined_call_operand.vmem [shape: f32[1,4], index: 2, kind: input, shape index: {}]   ;;  %s2381_s3 = inlined_call_operand.vmem [shape: bf16[4,4], index: 3, kind: input, shape index: {}]   ;;  %s2382_s4 = inlined_call_operand.vmem [shape: f32[1,4], index: 4, kind: input, shape index: {}]   ;;  %s2383_s5 = inlined_call_operand.vmem [shape: bf16[4,4], index: 5, kind: input, shape index: {}]   ;;  %s2384_s6 = inlined_call_operand.vmem [shape: f32[1,4], index: 6, kind: input, shape index: {}]   ;;  %s2385_s7 = inlined_call_operand.vmem [shape: f32[2,256,4], index: 7, kind: output, shape index: {}]  }
   0x1   :  { %s1922_s26 = smov 0   ;;  %s1924_s27 = smov 0  }
   0x2   :  { %s1926_s28 = smov 0  }
   0x3 LB: > { %s26_s29 = sadd.s32 1, %s1868_s26  ;;  %s29_s30 = sadd.s32 1, %s1872_s27  ;;  %s1876_s28 = sphi %s1926_s28, %s17_s28   ;;  %s1872_s27 = sphi %s1924_s27, %s2389_s27   ;;  %s1868_s26 = sphi %s1922_s26, %s2388_s26   ;;  %s1864_s25 = sphi %s1920_s25, %s2387_s25   ;;  %s1860_s24 = sphi %s1918_s24, %s2386_s24  }
   0x4   : > { %p27_p0 = scmp.ge.s32.totalorder %s26_s29, 2  ;;  %p1482_p1 = scmp.ge.s32.totalorder %s1876_s28, 1 }
   0x5   : > { %p251_p2 = scmp.lt.s32.totalorder %s1876_s28, 5 }
   0x6   : > { %s2391_s29 = smov (%p27_p0, %s26_s29), 0  ;;  %s2393_s30 = smov (!%p27_p0, %s29_s30), %s1872_s27 }
   0x7   : > { %p252_p3 = pnand %p1482_p1, %p251_p2  ;;  %p31_p4 = scmp.ge.s32.totalorder %s2393_s30, 2 }
   0x8   : > { %p287_p5 = scmp.lt.s32.totalorder (!%p252_p3), %s1864_s25, 1  ;;  %s1485_s8 = sshll.u32 (!%p252_p3), %s1860_s24, 4 }
   0x9   : > { %s2395_s30 = smov (%p31_p4, %s2393_s30), 0  ;;  %255 = sbr.rel (%p252_p3) target bundleno = 1497 (0x5d9), region = 48 }
   0xa   : > { %p295_p6 = scmp.lt.s32.totalorder (!%p252_p3), %s1485_s8, 31  ;;  %p1488_p7 = scmp.ne.s32.totalorder (!%p252_p3), %s1860_s24, 0 }
  0x10   : > { %s2397_s25 = smov (!%p287_p5, %s1864_s25), 1  ;;  %s2399_s8 = smov (!%p295_p6, %s1485_s8), 31 }
  0x11   : > { %s1543_s9 = sshll.u32 %s2397_s25, 8  ;;  %s1486_s10 = sshll.u32 %s2397_s25, 5  ;;  %v355_v0 = vld [vmem:[%s2381_s3] sm:$0x3] (!%p1488_p7)  ;;  %vm412_vm0 = vcmask (!%p1488_p7), 1041408   ;;  %vm363_vm1 = vcmask (!%p1488_p7), 31744  }
  0x12   : > { %s1954_s13 = scalar_lea.vmem %s2378_s0, %s1543_s9  ;;  %s298_s14 = sadd.s32 %s1486_s10, %s2399_s8  ;;  %1725 = vmatprep.subr.msk.bf16.mxu0 (!%p1488_p7), %vm412_vm0, %v355_v0  ;;  %1726 = vmatprep.subr.msk.bf16.mxu1 (!%p1488_p7), %vm412_vm0, %v355_v0  ;;  %v414_v3 = vsel (!%p1488_p7), %vm412_vm0, %v355_v0, 0 }
  0x13   : > { %s1487_s15 = sshll.u32 %s298_s14, 3  ;;  %306 = sbr.rel (%p1488_p7) target bundleno = 272 (0x110), region = 52  ;;  %v307_v1 = vld [vmem:[%s1954_s13] sm:$0xff] (!%p1488_p7)  ;;  %v308_v2 = vld [vmem:[%s1954_s13 + $0x8] sm:$0xff] (!%p1488_p7)  ;;  %v309_v7 = vld [vmem:[%s1954_s13 + $0x10] sm:$0xff] (!%p1488_p7)  ;;  %1604 = vmatpush3.bf16.msra.mxu0 (!%p1488_p7), %v414_v3  ;;  %1722 = vmatpush3.bf16.msra.mxu1 (!%p1488_p7), %v414_v3 }
  0x14   : > { %s1959_s18 = scalar_lea.vmem %s2385_s7, %s1487_s15  ;;  %v339_v4 = vpack.c.bf16 (!%p1488_p7), %v308_v2, %v307_v1  ;;  %v323_v5 = vld [vmem:[%s1954_s13 + $0x80] sm:$0xff] (!%p1488_p7)  ;;  %v324_v6 = vld [vmem:[%s1954_s13 + $0x88] sm:$0xff] (!%p1488_p7)  ;;  %v310_v9 = vld [vmem:[%s1954_s13 + $0x18] sm:$0xff] (!%p1488_p7) }
  0x15   : > { %v347_v8 = vpack.c.bf16 (!%p1488_p7), %v324_v6, %v323_v5  ;;  %v325_v10 = vld [vmem:[%s1954_s13 + $0x90] sm:$0xff] (!%p1488_p7)  ;;  %v326_v11 = vld [vmem:[%s1954_s13 + $0x98] sm:$0xff] (!%p1488_p7)  ;;  %v340_v12 = vpack.c.bf16 (!%p1488_p7), %v310_v9, %v309_v7  ;;  %v311_v14 = vld [vmem:[%s1954_s13 + $0x20] sm:$0xff] (!%p1488_p7) }
  0x16   : > { %1605 = vmatprep.mubr.msk.bf16.mxu0 (!%p1488_p7), %vm363_vm1, %v339_v4  ;;  %v348_v13 = vpack.c.bf16 (!%p1488_p7), %v326_v11, %v325_v10  ;;  %v312_v15 = vld [vmem:[%s1954_s13 + $0x28] sm:$0xff] (!%p1488_p7)  ;;  %v327_v16 = vld [vmem:[%s1954_s13 + $0xa0] sm:$0xff] (!%p1488_p7)  ;;  %v313_v20 = vld [vmem:[%s1954_s13 + $0x30] sm:$0xff] (!%p1488_p7) }
  0x17   : > { %1621 = vmatprep.mubr.msk.bf16.mxu1 (!%p1488_p7), %vm363_vm1, %v347_v8  ;;  %v341_v17 = vpack.c.bf16 (!%p1488_p7), %v312_v15, %v311_v14  ;;  %v328_v18 = vld [vmem:[%s1954_s13 + $0xa8] sm:$0xff] (!%p1488_p7)  ;;  %1606 = vmatmul.mubr.msk.bf16.vlgmr.msra.gmra.mrb[0].mxu0 (!%p1488_p7), %vm363_vm1, %v340_v12  ;;  %v314_v21 = vld [vmem:[%s1954_s13 + $0x38] sm:$0xff] (!%p1488_p7)  ;;  %v329_v22 = vld [vmem:[%s1954_s13 + $0xb0] sm:$0xff] (!%p1488_p7) }
  0x18   : > { %1622 = vmatmul.mubr.msk.bf16.vlgmr.msra.gmra.mrb[0].mxu1 (!%p1488_p7), %vm363_vm1, %v348_v13  ;;  %v349_v19 = vpack.c.bf16 (!%p1488_p7), %v328_v18, %v327_v16  ;;  %v330_v23 = vld [vmem:[%s1954_s13 + $0xb8] sm:$0xff] (!%p1488_p7)  ;;  %v315_v24 = vld [vmem:[%s1954_s13 + $0x40] sm:$0xff] (!%p1488_p7)  ;;  %v316_v25 = vld [vmem:[%s1954_s13 + $0x48] sm:$0xff] (!%p1488_p7)  ;;  %v342_v28 = vpack.c.bf16 (!%p1488_p7), %v314_v21, %v313_v20 }
  0x19   : > { %1609 = vmatprep.mubr.msk.bf16.mxu0 (!%p1488_p7), %vm363_vm1, %v341_v17  ;;  %v331_v26 = vld [vmem:[%s1954_s13 + $0xc0] sm:$0xff] (!%p1488_p7)  ;;  %v332_v27 = vld [vmem:[%s1954_s13 + $0xc8] sm:$0xff] (!%p1488_p7)  ;;  %v350_v29 = vpack.c.bf16 (!%p1488_p7), %v330_v23, %v329_v22  ;;  %v343_v30 = vpack.c.bf16 (!%p1488_p7), %v316_v25, %v315_v24  ;;  %v317_v32 = vld [vmem:[%s1954_s13 + $0x50] sm:$0xff] (!%p1488_p7) }
  0x1a   : > { %1625 = vmatprep.mubr.msk.bf16.mxu1 %vm363_vm1, %v349_v19  ;;  %v351_v31 = vpack.c.bf16 %v332_v27, %v331_v26  ;;  %v318_v33 = vld [vmem:[%s1954_s13 + $0x58] sm:$0xff]  ;;  %v333_v34 = vld [vmem:[%s1954_s13 + $0xd0] sm:$0xff]  ;;  %v319_v36 = vld [vmem:[%s1954_s13 + $0x60] sm:$0xff] }
  0x1b   : > { %v334_v35 = vld [vmem:[%s1954_s13 + $0xd8] sm:$0xff]  ;;  %v320_v37 = vld [vmem:[%s1954_s13 + $0x68] sm:$0xff]  ;;  %v335_v38 = vld [vmem:[%s1954_s13 + $0xe0] sm:$0xff]  ;;  %v344_v40 = vpack.c.bf16 %v318_v33, %v317_v32 }
  0x1c   : > { %v336_v39 = vld [vmem:[%s1954_s13 + $0xe8] sm:$0xff]  ;;  %v352_v41 = vpack.c.bf16 %v334_v35, %v333_v34  ;;  %v345_v42 = vpack.c.bf16 %v320_v37, %v319_v36  ;;  %v321_v44 = vld [vmem:[%s1954_s13 + $0x70] sm:$0xff]  ;;  %v322_v45 = vld [vmem:[%s1954_s13 + $0x78] sm:$0xff] }
  0x1d   : > { %v353_v43 = vpack.c.bf16 %v336_v39, %v335_v38  ;;  %v337_v46 = vld [vmem:[%s1954_s13 + $0xf0] sm:$0xff]  ;;  %v338_v47 = vld [vmem:[%s1954_s13 + $0xf8] sm:$0xff]  ;;  %v346_v48 = vpack.c.bf16 %v322_v45, %v321_v44  ;;  %v2016_v2 = vld [vmem:[%s2382_s4] ss:$0 sm:$0xff] }
  0x1e   : > { %v354_v49 = vpack.c.bf16 %v338_v47, %v337_v46 }
  0x1f   : > { %1610 = vmatmul.mubr.msk.bf16.gmra.mrb[4].mxu0 %vm363_vm1, %v342_v28 }
  0x20   : > { %1626 = vmatmul.mubr.msk.bf16.gmra.mrb[4].mxu1 %vm363_vm1, %v350_v29  ;;  %1613 = vmatprep.mubr.msk.bf16.mxu0 %vm363_vm1, %v343_v30 }
  0x21   : > { %1629 = vmatprep.mubr.msk.bf16.mxu1 %vm363_vm1, %v351_v31 }
  0x27   : > { %1614 = vmatmul.mubr.msk.bf16.gmra.mrb[8].mxu0 %vm363_vm1, %v344_v40 }
  0x28   : > { %1630 = vmatmul.mubr.msk.bf16.gmra.mrb[8].mxu1 %vm363_vm1, %v352_v41  ;;  %1617 = vmatprep.mubr.msk.bf16.mxu0 %vm363_vm1, %v345_v42 }
  0x29   : > { %1633 = vmatprep.mubr.msk.bf16.mxu1 %vm363_vm1, %v353_v43 }
  0x2f   : > { %1618 = vmatmul.mubr.msk.bf16.gmra.mrb[12].mxu0 %vm363_vm1, %v346_v48 }
  0x30   : > { %1634 = vmatmul.mubr.msk.bf16.gmra.mrb[12].mxu1 %vm363_vm1, %v354_v49 }
  0xea   : > { %v1607_v50 = vpop.f32.mrb[0].mxu0 }
  0xeb   : > { %v1623_v51 = vpop.f32.mrb[0].mxu1  ;;  %v450_v52 = vpop.f32.mrb[1].mxu0  ;;  %v459_v3 = vadd.f32 %v1607_v50, %v2016_v2 }
  0xec   : > { %v514_v53 = vpop.f32.mrb[1].mxu1  ;;  %v1608_v54 = vpop.f32.mrb[2].mxu0  ;;  %v523_v4 = vadd.f32 %v1623_v51, %v2016_v2  ;;  %v451_v5 = vadd.f32 %v2016_v2, %v450_v52 }
  0xed   : > { %v1624_v55 = vpop.f32.mrb[2].mxu1  ;;  %v453_v56 = vpop.f32.mrb[3].mxu0  ;;  %v515_v6 = vadd.f32 %v2016_v2, %v514_v53  ;;  %v462_v9 = vadd.f32 %v1608_v54, %v2016_v2 }
  0xee   : > { %v517_v57 = vpop.f32.mrb[3].mxu1  ;;  %v526_v10 = vadd.f32 %v1624_v55, %v2016_v2  ;;  %v454_v15 = vadd.f32 %v2016_v2, %v453_v56 }
  0xef   : > { %v518_v16 = vadd.f32 %v2016_v2, %v517_v57 }
  0xf2   : > { %v1611_v58 = vpop.f32.mrb[4].mxu0 }
  0xf3   : > { %v1627_v59 = vpop.f32.mrb[4].mxu1  ;;  %v466_v60 = vpop.f32.mrb[5].mxu0  ;;  %v475_v37 = vadd.f32 %v1611_v58, %v2016_v2 }
  0xf4   : > { %v530_v61 = vpop.f32.mrb[5].mxu1  ;;  %v1612_v62 = vpop.f32.mrb[6].mxu0  ;;  %v539_v38 = vadd.f32 %v1627_v59, %v2016_v2  ;;  %v467_v39 = vadd.f32 %v2016_v2, %v466_v60 }
  0xf5   : > { %v1628_v63 = vpop.f32.mrb[6].mxu1  ;;  %v469_v0 = vpop.f32.mrb[7].mxu0  ;;  %v531_v41 = vadd.f32 %v2016_v2, %v530_v61  ;;  %v478_v42 = vadd.f32 %v1612_v62, %v2016_v2 }
  0xf6   : > { %v533_v1 = vpop.f32.mrb[7].mxu1  ;;  %v542_v43 = vadd.f32 %v1628_v63, %v2016_v2  ;;  %v470_v47 = vadd.f32 %v2016_v2, %v469_v0 }
  0xf7   : > { %v534_v53 = vadd.f32 %v2016_v2, %v533_v1 }
  0xfa   : > { %v1615_v7 = vpop.f32.mrb[8].mxu0 }
  0xfb   : > { %v1631_v8 = vpop.f32.mrb[8].mxu1  ;;  %v491_v11 = vadd.f32 %v1615_v7, %v2016_v2  ;;  %v482_v13 = vpop.f32.mrb[9].mxu0 }
  0xfc   : > { %v555_v12 = vadd.f32 %v1631_v8, %v2016_v2  ;;  %v546_v14 = vpop.f32.mrb[9].mxu1  ;;  %v483_v17 = vadd.f32 %v2016_v2, %v482_v13  ;;  %v1616_v19 = vpop.f32.mrb[10].mxu0 }
  0xfd   : > { %v547_v18 = vadd.f32 %v2016_v2, %v546_v14  ;;  %v1632_v20 = vpop.f32.mrb[10].mxu1  ;;  %v579_v21 = vmax.f32 %v459_v3, %v491_v11  ;;  %v494_v23 = vadd.f32 %v1616_v19, %v2016_v2  ;;  %v485_v25 = vpop.f32.mrb[11].mxu0 }
  0xfe   : > { %v587_v22 = vmax.f32 %v523_v4, %v555_v12  ;;  %v558_v24 = vadd.f32 %v1632_v20, %v2016_v2  ;;  %v549_v26 = vpop.f32.mrb[11].mxu1  ;;  %v577_v27 = vmax.f32 %v451_v5, %v483_v17  ;;  %v486_v29 = vadd.f32 %v2016_v2, %v485_v25 }
  0xff   : > { %v585_v28 = vmax.f32 %v515_v6, %v547_v18  ;;  %v550_v30 = vadd.f32 %v2016_v2, %v549_v26  ;;  %v580_v32 = vmax.f32 %v462_v9, %v494_v23 }
 0x100   : > { %v595_v31 = vmax.f32 %v579_v21, %v587_v22  ;;  %v588_v33 = vmax.f32 %v526_v10, %v558_v24  ;;  %v578_v35 = vmax.f32 %v454_v15, %v486_v29 }
 0x101   : > { %v593_v34 = vmax.f32 %v577_v27, %v585_v28  ;;  %v586_v36 = vmax.f32 %v518_v16, %v550_v30 }
 0x102   : > { %v596_v40 = vmax.f32 %v580_v32, %v588_v33  ;;  %v1619_v45 = vpop.f32.mrb[12].mxu0 }
 0x103   : > { %v594_v44 = vmax.f32 %v578_v35, %v586_v36  ;;  %v1635_v46 = vpop.f32.mrb[12].mxu1  ;;  %v507_v49 = vadd.f32 %v1619_v45, %v2016_v2  ;;  %v498_v51 = vpop.f32.mrb[13].mxu0 }
 0x104   : > { %v602_v48 = vpack.c.bf16 %v596_v40, %v595_v31  ;;  %v571_v50 = vadd.f32 %v1635_v46, %v2016_v2  ;;  %v562_v52 = vpop.f32.mrb[13].mxu1  ;;  %v499_v55 = vadd.f32 %v2016_v2, %v498_v51  ;;  %v1620_v57 = vpop.f32.mrb[14].mxu0 }
 0x105   : > { %v601_v54 = vpack.c.bf16 %v594_v44, %v593_v34  ;;  %v563_v56 = vadd.f32 %v2016_v2, %v562_v52  ;;  %v1636_v58 = vpop.f32.mrb[14].mxu1  ;;  %v583_v59 = vmax.f32 %v475_v37, %v507_v49  ;;  %v510_v61 = vadd.f32 %v1620_v57, %v2016_v2  ;;  %v501_v63 = vpop.f32.mrb[15].mxu0 }
 0x106   : > { %606 = vst.msk [vmem:[#allocation2 + $0x8] sm:$0xff] %vm363_vm1, %v602_v48  ;;  %v591_v60 = vmax.f32 %v539_v38, %v571_v50  ;;  %v574_v62 = vadd.f32 %v1636_v58, %v2016_v2  ;;  %v565_v0 = vpop.f32.mrb[15].mxu1  ;;  %v581_v1 = vmax.f32 %v467_v39, %v499_v55  ;;  %v502_v4 = vadd.f32 %v2016_v2, %v501_v63 }
 0x107   : > { %605 = vst.msk [vmem:[#allocation2] sm:$0xff] %vm363_vm1, %v601_v54  ;;  %v589_v3 = vmax.f32 %v531_v41, %v563_v56  ;;  %v566_v5 = vadd.f32 %v2016_v2, %v565_v0  ;;  %v584_v7 = vmax.f32 %v478_v42, %v510_v61 }
 0x108   : > { %v599_v6 = vmax.f32 %v583_v59, %v591_v60  ;;  %v592_v8 = vmax.f32 %v542_v43, %v574_v62  ;;  %v582_v10 = vmax.f32 %v470_v47, %v502_v4 }
 0x109   : > { %v597_v9 = vmax.f32 %v581_v1, %v589_v3  ;;  %v590_v11 = vmax.f32 %v534_v53, %v566_v5 }
 0x10a   : > { %v600_v12 = vmax.f32 %v584_v7, %v592_v8 }
 0x10b   : > { %v598_v13 = vmax.f32 %v582_v10, %v590_v11 }
 0x10c   : > { %v604_v14 = vpack.c.bf16 %v600_v12, %v599_v6 }
 0x10d   : > { %v603_v15 = vpack.c.bf16 %v598_v13, %v597_v9 }
 0x10e   : > { %608 = vst.msk [vmem:[#allocation2 + $0x18] sm:$0xff] %vm363_vm1, %v604_v14 }
 0x10f   : > { %607 = vst.msk [vmem:[#allocation2 + $0x10] sm:$0xff] %vm363_vm1, %v603_v15 }
 0x110 PF: > { %v635_v2 = vld [vmem:[%s2379_s1] sm:$0x3]  ;;  %vm668_vm2 = vcmask 1041408   ;;  %s1506_s8 = sshll.u32 %s1860_s24, 7  ;;  %vm643_vm3 = vcmask 31744   ;;  %v770_v19 = vld [vmem:[#allocation2 + $0x8] sm:$0xff] }
 0x111   : > { %v769_v16 = vld [vmem:[#allocation2] sm:$0xff]  ;;  %1727 = vmatprep.subr.msk.bf16.mxu0 %vm668_vm2, %v635_v2  ;;  %v670_v17 = vsel %vm668_vm2, %v635_v2, 0  ;;  %s2061_s9 = scalar_lea.vmem %s1954_s13, %s1506_s8  ;;  %v809_v31 = vsel %vm643_vm3, %v770_v19, 0  ;;  %vm914_vm4 = vcmask 523264  }
 0x112   : > { %1728 = vmatprep.subr.msk.bf16.mxu1 %vm643_vm3, %v769_v16  ;;  %v806_v18 = vsel %vm643_vm3, %v769_v16, 0  ;;  %1638 = vmatpush3.bf16.msra.mxu0 %v670_v17  ;;  %v2066_v20 = vld [vmem:[%s2061_s9] sm:$0xff]  ;;  %v2069_v21 = vld [vmem:[%s2061_s9 + $0x8] sm:$0xff]  ;;  %v2072_v22 = vld [vmem:[%s2061_s9 + $0x10] sm:$0xff] }
 0x113   : > { %1656 = vmatpush3.bf16.xpose.msra.mxu1 %v806_v18  ;;  %v627_v23 = vpack.c.bf16 %v2069_v21, %v2066_v20  ;;  %v2077_v24 = vld [vmem:[%s2061_s9 + $0x18] sm:$0xff]  ;;  %v2080_v25 = vld [vmem:[%s2061_s9 + $0x20] sm:$0xff]  ;;  %v2083_v26 = vld [vmem:[%s2061_s9 + $0x28] sm:$0xff]  ;;  %1679 = vmatprep.subr.bf16.mxu0 %v769_v16 }
 0x114   : > { %1729 = vmatprep.subr.msk.bf16.mxu1 %vm643_vm3, %v770_v19  ;;  %v628_v27 = vpack.c.bf16 %v2077_v24, %v2072_v22  ;;  %v629_v28 = vpack.c.bf16 %v2083_v26, %v2080_v25  ;;  %v2094_v29 = vld [vmem:[%s2061_s9 + $0x30] sm:$0xff]  ;;  %v2097_v30 = vld [vmem:[%s2061_s9 + $0x38] sm:$0xff]  ;;  %v2101_v32 = vld [vmem:[%s2061_s9 + $0x40] sm:$0xff] }
 0x115   : > { %1639 = vmatprep.mubr.msk.bf16.mxu0 %vm643_vm3, %v627_v23  ;;  %v2104_v33 = vld [vmem:[%s2061_s9 + $0x48] sm:$0xff]  ;;  %v630_v35 = vpack.c.bf16 %v2097_v30, %v2094_v29  ;;  %v2114_v37 = vld [vmem:[%s2061_s9 + $0x50] sm:$0xff]  ;;  %v2117_v38 = vld [vmem:[%s2061_s9 + $0x58] sm:$0xff] }
 0x116   : > { %1640 = vmatmul.mubr.msk.bf16.vlgmr.msra.gmra.mrb[0].mxu0 %vm643_vm3, %v628_v27  ;;  %v771_v34 = vld [vmem:[#allocation2 + $0x10] sm:$0xff]  ;;  %v631_v36 = vpack.c.bf16 %v2104_v33, %v2101_v32  ;;  %v2121_v40 = vld [vmem:[%s2061_s9 + $0x60] sm:$0xff]  ;;  %v2124_v41 = vld [vmem:[%s2061_s9 + $0x68] sm:$0xff]  ;;  %v632_v42 = vpack.c.bf16 %v2117_v38, %v2114_v37 }
 0x117   : > { %1643 = vmatprep.mubr.msk.bf16.mxu0 %vm643_vm3, %v629_v28  ;;  %1680 = vmatpush3.bf16.msra.mxu0 %v769_v16  ;;  %v812_v39 = vsel %vm643_vm3, %v771_v34, 0  ;;  %v633_v43 = vpack.c.bf16 %v2124_v41, %v2121_v40  ;;  %v2133_v44 = vld [vmem:[%s2061_s9 + $0x70] sm:$0xff]  ;;  %v2136_v45 = vld [vmem:[%s2061_s9 + $0x78] sm:$0xff]  ;;  %v1507_v50 = vld [vmem:[%s2380_s2] ss:$0 sm:$0xff] }
 0x118   : > { %1681 = vmatprep.subr.bf16.mxu0 %v770_v19  ;;  %v634_v46 = vpack.c.bf16 %v2136_v45, %v2133_v44  ;;  %v772_v47 = vld [vmem:[#allocation2 + $0x18] sm:$0xff] }
 0x119   : > { %v815_v48 = vsel %vm643_vm3, %v772_v47, 0 }
 0x11b   : > { %1658 = vmatpush3.bf16.xpose.msra.mxu1 %v809_v31  ;;  %1682 = vmatpush3.bf16.msra.mxu0 %v770_v19 }
 0x11c   : > { %1730 = vmatprep.subr.msk.bf16.mxu1 %vm643_vm3, %v771_v34  ;;  %1683 = vmatprep.subr.bf16.mxu0 %v771_v34 }
 0x11e   : > { %1644 = vmatmul.mubr.msk.bf16.gmra.mrb[4].mxu0 %vm643_vm3, %v630_v35 }
 0x11f   : > { %1647 = vmatprep.mubr.msk.bf16.mxu0 %vm643_vm3, %v631_v36  ;;  %1684 = vmatpush3.bf16.msra.mxu0 %v771_v34 }
 0x120   : > { %1685 = vmatprep.subr.bf16.mxu0 %v772_v47 }
 0x123   : > { %1660 = vmatpush3.bf16.xpose.msra.mxu1 %v812_v39  ;;  %1686 = vmatpush3.bf16.msra.mxu0 %v772_v47 }
 0x124   : > { %1731 = vmatprep.subr.msk.bf16.mxu1 %vm643_vm3, %v772_v47 }
 0x126   : > { %1648 = vmatmul.mubr.msk.bf16.gmra.mrb[8].mxu0 %vm643_vm3, %v632_v42 }
 0x127   : > { %1651 = vmatprep.mubr.msk.bf16.mxu0 %vm643_vm3, %v633_v43 }
 0x12b   : > { %1662 = vmatpush3.bf16.xpose.msra.mxu1 %v815_v48 }
 0x12e   : > { %1652 = vmatmul.mubr.msk.bf16.gmra.mrb[12].mxu0 %vm643_vm3, %v634_v46 }
 0x1e9   : > { %v1641_v49 = vpop.f32.mrb[0].mxu0 }
 0x1ea   : > { %v706_v51 = vpop.f32.mrb[1].mxu0  ;;  %v715_v53 = vadd.f32 %v1641_v49, %v1507_v50 }
 0x1eb   : > { %v1642_v52 = vpop.f32.mrb[2].mxu0  ;;  %v707_v56 = vadd.f32 %v1507_v50, %v706_v51 }
 0x1ec   : > { %v718_v54 = vadd.f32 %v1642_v52, %v1507_v50  ;;  %v709_v55 = vpop.f32.mrb[3].mxu0 }
 0x1ed   : > { %v710_v57 = vadd.f32 %v1507_v50, %v709_v55 }
 0x1ee   : > { %v774_v58 = vpack.c.bf16 %v718_v54, %v715_v53 }
 0x1ef   : > { %v773_v59 = vpack.c.bf16 %v710_v57, %v707_v56 }
 0x1f1   : > { %v1645_v60 = vpop.f32.mrb[4].mxu0  ;;  %1663 = vmatprep.mubr.msk.bf16.mxu1 %vm643_vm3, %v773_v59 }
 0x1f2   : > { %v731_v61 = vadd.f32 %v1645_v60, %v1507_v50  ;;  %v722_v62 = vpop.f32.mrb[5].mxu0  ;;  %1664 = vmatmul.mubr.msk.bf16.vlgmr.msra.gmra.mrb[0].mxu1 %vm643_vm3, %v774_v58 }
 0x1f3   : > { %v723_v63 = vadd.f32 %v1507_v50, %v722_v62  ;;  %v1646_v0 = vpop.f32.mrb[6].mxu0 }
 0x1f4   : > { %v734_v1 = vadd.f32 %v1646_v0, %v1507_v50  ;;  %v725_v3 = vpop.f32.mrb[7].mxu0 }
 0x1f5   : > { %v726_v4 = vadd.f32 %v1507_v50, %v725_v3 }
 0x1f6   : > { %v776_v5 = vpack.c.bf16 %v734_v1, %v731_v61 }
 0x1f7   : > { %v775_v6 = vpack.c.bf16 %v726_v4, %v723_v63 }
 0x1f9   : > { %v1649_v7 = vpop.f32.mrb[8].mxu0  ;;  %1667 = vmatprep.mubr.msk.bf16.mxu1 %vm643_vm3, %v775_v6 }
 0x1fa   : > { %v747_v8 = vadd.f32 %v1649_v7, %v1507_v50  ;;  %v738_v9 = vpop.f32.mrb[9].mxu0  ;;  %1668 = vmatmul.mubr.msk.bf16.gmra.mrb[4].mxu1 %vm643_vm3, %v776_v5 }
 0x1fb   : > { %v739_v10 = vadd.f32 %v1507_v50, %v738_v9  ;;  %v1650_v11 = vpop.f32.mrb[10].mxu0 }
 0x1fc   : > { %v750_v12 = vadd.f32 %v1650_v11, %v1507_v50  ;;  %v741_v13 = vpop.f32.mrb[11].mxu0 }
 0x1fd   : > { %v742_v14 = vadd.f32 %v1507_v50, %v741_v13 }
 0x1fe   : > { %v778_v15 = vpack.c.bf16 %v750_v12, %v747_v8 }
 0x1ff   : > { %v777_v2 = vpack.c.bf16 %v742_v14, %v739_v10 }
 0x201   : > { %v1653_v16 = vpop.f32.mrb[12].mxu0  ;;  %1671 = vmatprep.mubr.msk.bf16.mxu1 %vm643_vm3, %v777_v2 }
 0x202   : > { %v763_v17 = vadd.f32 %v1653_v16, %v1507_v50  ;;  %v754_v18 = vpop.f32.mrb[13].mxu0  ;;  %1672 = vmatmul.mubr.msk.bf16.gmra.mrb[8].mxu1 %vm643_vm3, %v778_v15 }
 0x203   : > { %v755_v19 = vadd.f32 %v1507_v50, %v754_v18  ;;  %v1654_v23 = vpop.f32.mrb[14].mxu0 }
 0x204   : > { %v766_v27 = vadd.f32 %v1654_v23, %v1507_v50  ;;  %v757_v28 = vpop.f32.mrb[15].mxu0 }
 0x205   : > { %v758_v31 = vadd.f32 %v1507_v50, %v757_v28 }
 0x206   : > { %v780_v34 = vpack.c.bf16 %v766_v27, %v763_v17 }
 0x207   : > { %v779_v35 = vpack.c.bf16 %v758_v31, %v755_v19 }
 0x209   : > { %1675 = vmatprep.mubr.msk.bf16.mxu1 %vm643_vm3, %v779_v35 }
 0x20a   : > { %1676 = vmatmul.mubr.msk.bf16.gmra.mrb[12].mxu1 %vm643_vm3, %v780_v34 }
 0x2c5   : > { %v1665_v36 = vpop.f32.mrb[0].mxu1 }
 0x2c6   : > { %v851_v39 = vpop.f32.mrb[1].mxu1  ;;  %v921_v42 = vsel %vm914_vm4, %v1665_v36, -inf }
 0x2c7   : > { %922 = vmax.xlane.f32.xlu1 %v921_v42  ;;  %v1666_v43 = vpop.f32.mrb[2].mxu1  ;;  %v915_v46 = vsel %vm914_vm4, %v851_v39, -inf }
 0x2c8   : > { %916 = vmax.xlane.f32.xlu0 %v915_v46  ;;  %v854_v47 = vpop.f32.mrb[3].mxu1  ;;  %v924_v48 = vsel %vm914_vm4, %v1666_v43, -inf }
 0x2c9   : > { %v918_v49 = vsel %vm914_vm4, %v854_v47, -inf }
 0x2cb   : > { %925 = vmax.xlane.f32.xlu1 %v924_v48 }
 0x2cc   : > { %919 = vmax.xlane.f32.xlu0 %v918_v49 }
 0x2cd   : > { %v2158_v50 = vpop.f32.mrb[4].mxu1 }
 0x2ce   : > { %v867_v51 = vpop.f32.mrb[5].mxu1  ;;  %v933_v56 = vsel %vm914_vm4, %v2158_v50, -inf }
 0x2cf   : > { %v2160_v52 = vpop.f32.mrb[6].mxu1  ;;  %v927_v53 = vsel %vm914_vm4, %v867_v51, -inf }
 0x2d0   : > { %928 = vmax.xlane.f32.xlu0 %v927_v53  ;;  %v870_v54 = vpop.f32.mrb[7].mxu1  ;;  %v936_v58 = vsel %vm914_vm4, %v2160_v52, -inf }
 0x2d1   : > { %v930_v55 = vsel %vm914_vm4, %v870_v54, -inf }
 0x2d2   : > { %931 = vmax.xlane.f32.xlu1 %v930_v55 }
 0x2d4   : > { %934 = vmax.xlane.f32.xlu0 %v933_v56 }
 0x2d5   : > { %v2166_v57 = vpop.f32.mrb[8].mxu1 }
 0x2d6   : > { %937 = vmax.xlane.f32.xlu1 %v936_v58  ;;  %v2170_v59 = vpop.f32.mrb[9].mxu1  ;;  %v945_v0 = vsel %vm914_vm4, %v2166_v57, -inf }
 0x2d7   : > { %v2172_v60 = vpop.f32.mrb[10].mxu1  ;;  %v939_v61 = vsel %vm914_vm4, %v2170_v59, -inf }
 0x2d8   : > { %940 = vmax.xlane.f32.xlu0 %v939_v61  ;;  %v2176_v62 = vpop.f32.mrb[11].mxu1  ;;  %v948_v3 = vsel %vm914_vm4, %v2172_v60, -inf }
 0x2d9   : > { %v942_v63 = vsel %vm914_vm4, %v2176_v62, -inf }
 0x2da   : > { %943 = vmax.xlane.f32.xlu1 %v942_v63 }
 0x2dc   : > { %946 = vmax.xlane.f32.xlu0 %v945_v0 }
 0x2dd   : > { %v2182_v1 = vpop.f32.mrb[12].mxu1 }
 0x2de   : > { %949 = vmax.xlane.f32.xlu1 %v948_v3  ;;  %v2186_v4 = vpop.f32.mrb[13].mxu1  ;;  %v957_v9 = vsel %vm914_vm4, %v2182_v1, -inf }
 0x2df   : > { %v2188_v5 = vpop.f32.mrb[14].mxu1  ;;  %v951_v6 = vsel %vm914_vm4, %v2186_v4, -inf }
 0x2e0   : > { %952 = vmax.xlane.f32.xlu0 %v951_v6  ;;  %v2192_v7 = vpop.f32.mrb[15].mxu1  ;;  %v960_v10 = vsel %vm914_vm4, %v2188_v5, -inf }
 0x2e1   : > { %v954_v8 = vsel %vm914_vm4, %v2192_v7, -inf }
 0x2e2   : > { %955 = vmax.xlane.f32.xlu1 %v954_v8 }
 0x2e4   : > { %958 = vmax.xlane.f32.xlu0 %v957_v9 }
 0x2e6   : > { %961 = vmax.xlane.f32.xlu1 %v960_v10 }
 0x354   : > { %v923_v11 = vpop.xlane.xlu1 %922 }
 0x355   : > { %v965_v12 = vsub.f32 %v1665_v36, %v923_v11  ;;  %v917_v13 = vpop.xlane.xlu0 %916 }
 0x356   : > { %v963_v14 = vsub.f32 %v851_v39, %v917_v13 }
 0x357   : > { %v983_v15 = vmul.f32 1.442695, %v965_v12 }
 0x358   : > { %v979_v2 = vmul.f32 1.442695, %v963_v14  ;;  %v926_v16 = vpop.xlane.xlu1 %925 }
 0x359   : > { %v966_v17 = vsub.f32 %v1666_v43, %v926_v16  ;;  %v920_v18 = vpop.xlane.xlu0 %919 }
 0x35a   : > { %1774 = vpow2.f32 %v979_v2  ;;  %v964_v19 = vsub.f32 %v854_v47, %v920_v18 }
 0x35b   : > { %1776 = vpow2.f32 %v983_v15  ;;  %v985_v23 = vmul.f32 1.442695, %v966_v17 }
 0x35c   : > { %v981_v27 = vmul.f32 1.442695, %v964_v19 }
 0x35d   : > { %v929_v28 = vpop.xlane.xlu0 %928 }
 0x35e   : > { %1778 = vpow2.f32 %v981_v27  ;;  %v967_v31 = vsub.f32 %v867_v51, %v929_v28 }
 0x35f   : > { %v932_v34 = vpop.xlane.xlu1 %931  ;;  %1780 = vpow2.f32 %v985_v23 }
 0x360   : > { %v987_v35 = vmul.f32 1.442695, %v967_v31  ;;  %v968_v42 = vsub.f32 %v870_v54, %v932_v34 }
 0x361   : > { %v935_v36 = vpop.xlane.xlu0 %934 }
 0x362   : > { %1782 = vpow2.f32 %v987_v35  ;;  %v989_v39 = vmul.f32 1.442695, %v968_v42  ;;  %v969_v46 = vsub.f32 %v2158_v50, %v935_v36 }
 0x363   : > { %v938_v48 = vpop.xlane.xlu1 %937 }
 0x364   : > { %v2201_v43 = vpop.eup %1774  ;;  %1784 = vpow2.f32 %v989_v39  ;;  %v991_v47 = vmul.f32 1.442695, %v969_v46  ;;  %v970_v49 = vsub.f32 %v2160_v52, %v938_v48 }
 0x365   : > { %v941_v53 = vpop.xlane.xlu0 %940  ;;  %v1011_v51 = vsel %vm914_vm4, %v2201_v43, 0.0  ;;  %v2206_v55 = vpop.eup %1776 }
 0x366   : > { %1786 = vpow2.f32 %v991_v47  ;;  %v993_v54 = vmul.f32 1.442695, %v970_v49  ;;  %v971_v56 = vsub.f32 %v2170_v59, %v941_v53  ;;  %1012 = vadd.xlane.f32.xlu0 %v1011_v51  ;;  %v1017_v52 = vsel %vm914_vm4, %v2206_v55, 0.0 }
 0x367   : > { %v944_v58 = vpop.xlane.xlu1 %943 }
 0x368   : > { %v2209_v50 = vpop.eup %1778  ;;  %1788 = vpow2.f32 %v993_v54  ;;  %v995_v61 = vmul.f32 1.442695, %v971_v56  ;;  %v972_v63 = vsub.f32 %v2176_v62, %v944_v58 }
 0x369   : > { %v947_v0 = vpop.xlane.xlu0 %946  ;;  %v1014_v3 = vsel %vm914_vm4, %v2209_v50, 0.0  ;;  %v2216_v6 = vpop.eup %1780 }
 0x36a   : > { %1790 = vpow2.f32 %v995_v61  ;;  %v997_v8 = vmul.f32 1.442695, %v972_v63  ;;  %v973_v59 = vsub.f32 %v2166_v57, %v947_v0  ;;  %1018 = vadd.xlane.f32.xlu0 %v1017_v52  ;;  %1015 = vadd.xlane.f32.xlu1 %v1014_v3  ;;  %v1020_v14 = vsel %vm914_vm4, %v2216_v6, 0.0  ;;  %v1228_v3 = vld [vmem:[%s2383_s5] sm:$0x3] }
 0x36b   : > { %v950_v9 = vpop.xlane.xlu1 %949  ;;  %1733 = vmatprep.subr.msk.bf16.mxu1 %vm668_vm2, %v1228_v3  ;;  %1732 = vmatprep.subr.msk.bf16.mxu0 %vm668_vm2, %v1228_v3 }
 0x36c   : > { %v2219_v10 = vpop.eup %1782  ;;  %1792 = vpow2.f32 %v997_v8  ;;  %v999_v62 = vmul.f32 1.442695, %v973_v59  ;;  %v974_v11 = vsub.f32 %v2172_v60, %v950_v9  ;;  %v1261_v8 = vsel %vm668_vm2, %v1228_v3, 0 }
 0x36d   : > { %v953_v12 = vpop.xlane.xlu0 %952  ;;  %v1023_v13 = vsel %vm914_vm4, %v2219_v10, 0.0  ;;  %1724 = vmatpush3.bf16.msra.mxu1 %v1261_v8 }
 0x36e   : > { %v2226_v15 = vpop.eup %1784  ;;  %1794 = vpow2.f32 %v999_v62  ;;  %v1001_v57 = vmul.f32 1.442695, %v974_v11  ;;  %v975_v2 = vsub.f32 %v2186_v4, %v953_v12  ;;  %1024 = vadd.xlane.f32.xlu0 %v1023_v13  ;;  %1021 = vadd.xlane.f32.xlu1 %v1020_v14 }
 0x36f   : > { %v956_v16 = vpop.xlane.xlu1 %955  ;;  %v1026_v27 = vsel %vm914_vm4, %v2226_v15, 0.0 }
 0x370   : > { %v2229_v17 = vpop.eup %1786  ;;  %1796 = vpow2.f32 %v1001_v57  ;;  %v1003_v60 = vmul.f32 1.442695, %v975_v2  ;;  %v976_v18 = vsub.f32 %v2192_v7, %v956_v16 }
 0x371   : > { %v959_v19 = vpop.xlane.xlu0 %958  ;;  %v1029_v23 = vsel %vm914_vm4, %v2229_v17, 0.0 }
 0x372   : > { %v2236_v28 = vpop.eup %1788  ;;  %1798 = vpow2.f32 %v1003_v60  ;;  %v1005_v4 = vmul.f32 1.442695, %v976_v18  ;;  %v977_v31 = vsub.f32 %v2182_v1, %v959_v19  ;;  %1030 = vadd.xlane.f32.xlu0 %v1029_v23  ;;  %1027 = vadd.xlane.f32.xlu1 %v1026_v27 }
 0x373   : > { %v962_v34 = vpop.xlane.xlu1 %961  ;;  %v1032_v39 = vsel %vm914_vm4, %v2236_v28, 0.0 }
 0x374   : > { %v2239_v35 = vpop.eup %1790  ;;  %1800 = vpow2.f32 %v1005_v4  ;;  %v1007_v7 = vmul.f32 1.442695, %v977_v31  ;;  %v978_v42 = vsub.f32 %v2188_v5, %v962_v34 }
 0x375   : > { %v1035_v36 = vsel %vm914_vm4, %v2239_v35, 0.0 }
 0x376   : > { %v2246_v46 = vpop.eup %1792  ;;  %1802 = vpow2.f32 %v1007_v7  ;;  %v1009_v48 = vmul.f32 1.442695, %v978_v42  ;;  %1036 = vadd.xlane.f32.xlu0 %v1035_v36  ;;  %1033 = vadd.xlane.f32.xlu1 %v1032_v39 }
 0x377   : > { %v1038_v5 = vsel %vm914_vm4, %v2246_v46, 0.0 }
 0x378   : > { %v2248_v1 = vpop.eup %1794  ;;  %1804 = vpow2.f32 %v1009_v48 }
 0x379   : > { %v1041_v47 = vsel %vm914_vm4, %v2248_v1, 0.0 }
 0x37a   : > { %v2254_v49 = vpop.eup %1796  ;;  %1042 = vadd.xlane.f32.xlu0 %v1041_v47  ;;  %1039 = vadd.xlane.f32.xlu1 %v1038_v5 }
 0x37b   : > { %v1044_v54 = vsel %vm914_vm4, %v2254_v49, 0.0 }
 0x37c   : > { %v2256_v53 = vpop.eup %1798 }
 0x37d   : > { %v1047_v51 = vsel %vm914_vm4, %v2256_v53, 0.0 }
 0x37e   : > { %v2262_v56 = vpop.eup %1800  ;;  %1048 = vadd.xlane.f32.xlu0 %v1047_v51  ;;  %1045 = vadd.xlane.f32.xlu1 %v1044_v54 }
 0x37f   : > { %v1050_v63 = vsel %vm914_vm4, %v2262_v56, 0.0 }
 0x380   : > { %v2264_v58 = vpop.eup %1802 }
 0x381   : > { %v1053_v61 = vsel %vm914_vm4, %v2264_v58, 0.0 }
 0x382   : > { %v2270_v0 = vpop.eup %1804  ;;  %1054 = vadd.xlane.f32.xlu0 %v1053_v61  ;;  %1051 = vadd.xlane.f32.xlu1 %v1050_v63 }
 0x383   : > { %v1056_v52 = vsel %vm914_vm4, %v2270_v0, 0.0 }
 0x386   : > { %1057 = vadd.xlane.f32.xlu1 %v1056_v52 }
 0x3f3   : > { %v1013_v59 = vpop.xlane.xlu0 %1012 }
 0x3f4   : > { %1806 = vrcp.f32 %v1013_v59 }
 0x3f7   : > { %v1019_v9 = vpop.xlane.xlu0 %1018  ;;  %v1016_v62 = vpop.xlane.xlu1 %1015 }
 0x3f8   : > { %1808 = vrcp.f32 %v1016_v62 }
 0x3f9   : > { %1810 = vrcp.f32 %v1019_v9 }
 0x3fb   : > { %v1025_v11 = vpop.xlane.xlu0 %1024  ;;  %v1022_v12 = vpop.xlane.xlu1 %1021 }
 0x3fc   : > { %1812 = vrcp.f32 %v1022_v12 }
 0x3fd   : > { %1814 = vrcp.f32 %v1025_v11 }
 0x3fe   : > { %v1807_v57 = vpop.eup %1806 }
 0x3ff   : > { %v1031_v13 = vpop.xlane.xlu0 %1030  ;;  %v1028_v14 = vpop.xlane.xlu1 %1027  ;;  %v1075_v18 = vmul.f32 %v1807_v57, %v2201_v43 }
 0x400   : > { %1816 = vrcp.f32 %v1028_v14 }
 0x401   : > { %1818 = vrcp.f32 %v1031_v13 }
 0x402   : > { %v1809_v2 = vpop.eup %1808 }
 0x403   : > { %v1037_v16 = vpop.xlane.xlu0 %1036  ;;  %v1034_v60 = vpop.xlane.xlu1 %1033  ;;  %v1076_v19 = vmul.f32 %v1809_v2, %v2209_v50 }
 0x404   : > { %v1811_v23 = vpop.eup %1810  ;;  %1820 = vrcp.f32 %v1034_v60 }
 0x405   : > { %v1091_v27 = vpack.c.bf16 %v1076_v19, %v1075_v18  ;;  %1822 = vrcp.f32 %v1037_v16  ;;  %v1077_v7 = vmul.f32 %v1811_v23, %v2206_v55 }
 0x406   : > { %v1813_v4 = vpop.eup %1812 }
 0x407   : > { %v1043_v31 = vpop.xlane.xlu0 %1042  ;;  %v1040_v34 = vpop.xlane.xlu1 %1039  ;;  %v1078_v42 = vmul.f32 %v1813_v4, %v2216_v6  ;;  %1687 = vmatprep.mubr.msk.bf16.mxu0 %vm914_vm4, %v1091_v27 }
 0x408   : > { %v1815_v36 = vpop.eup %1814  ;;  %1824 = vrcp.f32 %v1040_v34 }
 0x409   : > { %v1092_v39 = vpack.c.bf16 %v1078_v42, %v1077_v7  ;;  %1826 = vrcp.f32 %v1043_v31  ;;  %v1079_v47 = vmul.f32 %v1815_v36, %v2219_v10 }
 0x40a   : > { %v1817_v48 = vpop.eup %1816 }
 0x40b   : > { %v1049_v43 = vpop.xlane.xlu0 %1048  ;;  %v1046_v50 = vpop.xlane.xlu1 %1045  ;;  %1688 = vmatmul.mubr.msk.bf16.vlgmr.msra.gmra.mrb[16].mxu0 %vm914_vm4, %v1092_v39  ;;  %v1080_v5 = vmul.f32 %v1817_v48, %v2226_v15 }
 0x40c   : > { %v1819_v51 = vpop.eup %1818  ;;  %1828 = vrcp.f32 %v1046_v50  ;;  %1704 = vmatpush3.bf16.msra.mxu0 %v1261_v8 }
 0x40d   : > { %v1093_v55 = vpack.c.bf16 %v1080_v5, %v1079_v47  ;;  %1830 = vrcp.f32 %v1049_v43  ;;  %v1081_v63 = vmul.f32 %v1819_v51, %v2229_v17 }
 0x40e   : > { %v1821_v6 = vpop.eup %1820 }
 0x40f   : > { %v1055_v54 = vpop.xlane.xlu0 %1054  ;;  %v1052_v61 = vpop.xlane.xlu1 %1051  ;;  %1691 = vmatprep.mubr.msk.bf16.mxu0 %vm914_vm4, %v1093_v55  ;;  %v1082_v52 = vmul.f32 %v1821_v6, %v2236_v28 }
 0x410   : > { %v1823_v3 = vpop.eup %1822  ;;  %1832 = vrcp.f32 %v1052_v61 }
 0x411   : > { %1834 = vrcp.f32 %v1055_v54  ;;  %v1094_v10 = vpack.c.bf16 %v1082_v52, %v1081_v63  ;;  %v1083_v8 = vmul.f32 %v1823_v3, %v2239_v35  ;;  %v1532_v63 = vld [vmem:[%s2384_s6] ss:$0 sm:$0xff] }
 0x412   : > { %v1825_v59 = vpop.eup %1824 }
 0x413   : > { %v1058_v15 = vpop.xlane.xlu1 %1057  ;;  %1692 = vmatmul.mubr.msk.bf16.gmra.mrb[20].mxu0 %vm914_vm4, %v1094_v10  ;;  %v1084_v9 = vmul.f32 %v1825_v59, %v2246_v46  ;;  %v1827_v62 = vpop.eup %1826 }
 0x414   : > { %1836 = vrcp.f32 %v1058_v15  ;;  %v1085_v17 = vmul.f32 %v1827_v62, %v2248_v1 }
 0x415   : > { %v1095_v11 = vpack.c.bf16 %v1084_v9, %v1083_v8 }
 0x416   : > { %v1829_v12 = vpop.eup %1828 }
 0x417   : > { %1695 = vmatprep.mubr.msk.bf16.mxu0 %vm914_vm4, %v1095_v11  ;;  %v1086_v28 = vmul.f32 %v1829_v12, %v2254_v49  ;;  %v1831_v13 = vpop.eup %1830 }
 0x418   : > { %v1087_v16 = vmul.f32 %v1831_v13, %v2256_v53 }
 0x419   : > { %v1096_v14 = vpack.c.bf16 %v1086_v28, %v1085_v17 }
 0x41a   : > { %v1833_v57 = vpop.eup %1832 }
 0x41b   : > { %v1835_v2 = vpop.eup %1834  ;;  %1696 = vmatmul.mubr.msk.bf16.gmra.mrb[24].mxu0 %vm914_vm4, %v1096_v14  ;;  %v1088_v35 = vmul.f32 %v1833_v57, %v2262_v56 }
 0x41c   : > { %v1089_v18 = vmul.f32 %v1835_v2, %v2264_v58 }
 0x41d   : > { %v1097_v60 = vpack.c.bf16 %v1088_v35, %v1087_v16 }
 0x41e   : > { %v1837_v46 = vpop.eup %1836 }
 0x41f   : > { %v1090_v19 = vmul.f32 %v1837_v46, %v2270_v0  ;;  %1699 = vmatprep.mubr.msk.bf16.mxu0 %vm914_vm4, %v1097_v60 }
 0x421   : > { %v1098_v1 = vpack.c.bf16 %v1090_v19, %v1089_v18 }
 0x423   : > { %1700 = vmatmul.mubr.msk.bf16.gmra.mrb[28].mxu0 %vm914_vm4, %v1098_v1 }
 0x4de   : > { %v1689_v49 = vpop.f32.mrb[16].mxu0 }
 0x4df   : > { %v1157_v23 = vpop.f32.mrb[17].mxu0 }
 0x4e0   : > { %v1690_v27 = vpop.f32.mrb[18].mxu0 }
 0x4e1   : > { %v1221_v4 = vpack.c.bf16 %v1690_v27, %v1689_v49  ;;  %v1160_v31 = vpop.f32.mrb[19].mxu0 }
 0x4e2   : > { %v1220_v34 = vpack.c.bf16 %v1160_v31, %v1157_v23 }
 0x4e4   : > { %1705 = vmatprep.mubr.msk.bf16.mxu0 %vm643_vm3, %v1220_v34 }
 0x4e5   : > { %1706 = vmatmul.mubr.msk.bf16.vlgmr.msra.gmra.mrb[32].mxu0 %vm643_vm3, %v1221_v4 }
 0x4e6   : > { %v1693_v53 = vpop.f32.mrb[20].mxu0 }
 0x4e7   : > { %v1173_v56 = vpop.f32.mrb[21].mxu0 }
 0x4e8   : > { %v1694_v58 = vpop.f32.mrb[22].mxu0 }
 0x4e9   : > { %v1223_v7 = vpack.c.bf16 %v1694_v58, %v1693_v53  ;;  %v1176_v0 = vpop.f32.mrb[23].mxu0 }
 0x4ea   : > { %v1222_v42 = vpack.c.bf16 %v1176_v0, %v1173_v56 }
 0x4ec   : > { %1709 = vmatprep.mubr.msk.bf16.mxu1 %vm643_vm3, %v1222_v42 }
 0x4ed   : > { %1710 = vmatmul.mubr.msk.bf16.vlgmr.msra.gmra.mrb[16].mxu1 %vm643_vm3, %v1223_v7 }
 0x4ee   : > { %v1697_v36 = vpop.f32.mrb[24].mxu0 }
 0x4ef   : > { %v1189_v39 = vpop.f32.mrb[25].mxu0 }
 0x4f0   : > { %v1698_v48 = vpop.f32.mrb[26].mxu0 }
 0x4f1   : > { %v1225_v43 = vpack.c.bf16 %v1698_v48, %v1697_v36  ;;  %v1192_v50 = vpop.f32.mrb[27].mxu0 }
 0x4f2   : > { %v1224_v47 = vpack.c.bf16 %v1192_v50, %v1189_v39 }
 0x4f4   : > { %1713 = vmatprep.mubr.msk.bf16.mxu1 %vm643_vm3, %v1224_v47 }
 0x4f5   : > { %1714 = vmatmul.mubr.msk.bf16.gmra.mrb[20].mxu1 %vm643_vm3, %v1225_v43 }
 0x4f6   : > { %v1701_v5 = vpop.f32.mrb[28].mxu0 }
 0x4f7   : > { %v1205_v51 = vpop.f32.mrb[29].mxu0 }
 0x4f8   : > { %v1702_v55 = vpop.f32.mrb[30].mxu0 }
 0x4f9   : > { %v1227_v6 = vpack.c.bf16 %v1702_v55, %v1701_v5  ;;  %v1208_v54 = vpop.f32.mrb[31].mxu0 }
 0x4fa   : > { %v1226_v61 = vpack.c.bf16 %v1208_v54, %v1205_v51 }
 0x4fc   : > { %1717 = vmatprep.mubr.msk.bf16.mxu1 %vm643_vm3, %v1226_v61 }
 0x4fd   : > { %1718 = vmatmul.mubr.msk.bf16.gmra.mrb[24].mxu1 %vm643_vm3, %v1227_v6 }
 0x5b8   : > { %v1707_v52 = vpop.f32.mrb[32].mxu0 }
 0x5b9   : > { %v1306_v3 = vadd.f32 %v1707_v52, %v1532_v63  ;;  %v1297_v10 = vpop.f32.mrb[33].mxu0 }
 0x5ba   : > { %v1298_v59 = vadd.f32 %v1532_v63, %v1297_v10  ;;  %v1708_v15 = vpop.f32.mrb[34].mxu0 }
 0x5bb   : > { %v1362_v8 = vadd.f32 %v1306_v3, %v2072_v22  ;;  %v1309_v9 = vadd.f32 %v1708_v15, %v1532_v63  ;;  %v1300_v62 = vpop.f32.mrb[35].mxu0 }
 0x5bc   : > { %v1360_v11 = vadd.f32 %v1298_v59, %v2066_v20  ;;  %v1301_v12 = vadd.f32 %v1532_v63, %v1300_v62 }
 0x5bd   : > { %1378 = vst.msk [vmem:[%s1959_s18 + $0x10] sm:$0xff] %vm643_vm3, %v1362_v8  ;;  %v1363_v17 = vadd.f32 %v1309_v9, %v2077_v24 }
 0x5be   : > { %1376 = vst.msk [vmem:[%s1959_s18] sm:$0xff] %vm643_vm3, %v1360_v11  ;;  %v1361_v28 = vadd.f32 %v1301_v12, %v2069_v21 }
 0x5bf   : > { %1379 = vst.msk [vmem:[%s1959_s18 + $0x18] sm:$0xff] %vm643_vm3, %v1363_v17 }
 0x5c0   : > { %1377 = vst.msk [vmem:[%s1959_s18 + $0x8] sm:$0xff] %vm643_vm3, %v1361_v28  ;;  %v1711_v22 = vpop.f32.mrb[16].mxu1 }
 0x5c1   : > { %v1322_v13 = vadd.f32 %v1711_v22, %v1532_v63  ;;  %v1313_v20 = vpop.f32.mrb[17].mxu1 }
 0x5c2   : > { %v1314_v14 = vadd.f32 %v1532_v63, %v1313_v20  ;;  %v1712_v57 = vpop.f32.mrb[18].mxu1 }
 0x5c3   : > { %v1366_v2 = vadd.f32 %v1322_v13, %v2094_v29  ;;  %v1325_v16 = vadd.f32 %v1712_v57, %v1532_v63  ;;  %v1316_v24 = vpop.f32.mrb[19].mxu1 }
 0x5c4   : > { %v1364_v35 = vadd.f32 %v1314_v14, %v2080_v25  ;;  %v1317_v46 = vadd.f32 %v1532_v63, %v1316_v24 }
 0x5c5   : > { %1382 = vst.msk [vmem:[%s1959_s18 + $0x30] sm:$0xff] %vm643_vm3, %v1366_v2  ;;  %v1367_v21 = vadd.f32 %v1325_v16, %v2097_v30 }
 0x5c6   : > { %1380 = vst.msk [vmem:[%s1959_s18 + $0x20] sm:$0xff] %vm643_vm3, %v1364_v35  ;;  %v1365_v60 = vadd.f32 %v1317_v46, %v2083_v26 }
 0x5c7   : > { %1383 = vst.msk [vmem:[%s1959_s18 + $0x38] sm:$0xff] %vm643_vm3, %v1367_v21 }
 0x5c8   : > { %1381 = vst.msk [vmem:[%s1959_s18 + $0x28] sm:$0xff] %vm643_vm3, %v1365_v60  ;;  %v1715_v29 = vpop.f32.mrb[20].mxu1 }
 0x5c9   : > { %v1338_v18 = vadd.f32 %v1715_v29, %v1532_v63  ;;  %v1329_v25 = vpop.f32.mrb[21].mxu1 }
 0x5ca   : > { %v1330_v19 = vadd.f32 %v1532_v63, %v1329_v25  ;;  %v1716_v1 = vpop.f32.mrb[22].mxu1 }
 0x5cb   : > { %v1370_v49 = vadd.f32 %v1338_v18, %v2114_v37  ;;  %v1341_v23 = vadd.f32 %v1716_v1, %v1532_v63  ;;  %v1332_v30 = vpop.f32.mrb[23].mxu1 }
 0x5cc   : > { %v1368_v27 = vadd.f32 %v1330_v19, %v2101_v32  ;;  %v1333_v4 = vadd.f32 %v1532_v63, %v1332_v30 }
 0x5cd   : > { %1386 = vst.msk [vmem:[%s1959_s18 + $0x50] sm:$0xff] %vm643_vm3, %v1370_v49  ;;  %v1371_v26 = vadd.f32 %v1341_v23, %v2117_v38 }
 0x5ce   : > { %1384 = vst.msk [vmem:[%s1959_s18 + $0x40] sm:$0xff] %vm643_vm3, %v1368_v27  ;;  %v1369_v31 = vadd.f32 %v1333_v4, %v2104_v33 }
 0x5cf   : > { %1387 = vst.msk [vmem:[%s1959_s18 + $0x58] sm:$0xff] %vm643_vm3, %v1371_v26 }
 0x5d0   : > { %1385 = vst.msk [vmem:[%s1959_s18 + $0x48] sm:$0xff] %vm643_vm3, %v1369_v31  ;;  %v1719_v37 = vpop.f32.mrb[24].mxu1 }
 0x5d1   : > { %v1354_v34 = vadd.f32 %v1719_v37, %v1532_v63  ;;  %v1345_v32 = vpop.f32.mrb[25].mxu1 }
 0x5d2   : > { %v1346_v53 = vadd.f32 %v1532_v63, %v1345_v32  ;;  %v1720_v56 = vpop.f32.mrb[26].mxu1 }
 0x5d3   : > { %v1374_v58 = vadd.f32 %v1354_v34, %v2133_v44  ;;  %v1357_v7 = vadd.f32 %v1720_v56, %v1532_v63  ;;  %v1348_v38 = vpop.f32.mrb[27].mxu1 }
 0x5d4   : > { %v1372_v0 = vadd.f32 %v1346_v53, %v2121_v40  ;;  %v1349_v42 = vadd.f32 %v1532_v63, %v1348_v38 }
 0x5d5   : > { %1390 = vst.msk [vmem:[%s1959_s18 + $0x70] sm:$0xff] %vm643_vm3, %v1374_v58  ;;  %v1375_v33 = vadd.f32 %v1357_v7, %v2136_v45 }
 0x5d6   : > { %1388 = vst.msk [vmem:[%s1959_s18 + $0x60] sm:$0xff] %vm643_vm3, %v1372_v0  ;;  %v1373_v36 = vadd.f32 %v1349_v42, %v2124_v41 }
 0x5d7   : > { %1391 = vst.msk [vmem:[%s1959_s18 + $0x78] sm:$0xff] %vm643_vm3, %v1375_v33 }
 0x5d8   : > { %1389 = vst.msk [vmem:[%s1959_s18 + $0x68] sm:$0xff] %vm643_vm3, %v1373_v36 }
 0x5d9 PF: > { %s17_s28 = sadd.s32 1, %s1876_s28   ;;  %s2386_s24 = smov %s1868_s26 }
 0x5da   : > { %p14_p8 = scmp.ge.s32.totalorder %s17_s28, 6   ;;  %s2387_s25 = smov %s1872_s27 }
 0x5db   : > { %s2388_s26 = smov %s2391_s29  ;;  %s2389_s27 = smov %s2395_s30 }
 0x5dc   :  { %16 = sbr.rel (!%p14_p8) target bundleno = 3 (0x3), region = 83 }

</bundles_post_ra>
